<compile_context>
chip_gen: v7x
topology: tpu7x:2x2x1
jax: 0.10.0
libtpu: 0.0.40
codegen_flags: <defaults>
</compile_context>

<pallas_src>
import functools

import jax
import jax.numpy as jnp
from jax import lax
from jax.experimental import pallas as pl
from jax.experimental.pallas import tpu as pltpu


def _round_up(a: int, b: int) -> int:
    return (a + b - 1) // b * b


def _sublane_multiple(itemsize: int) -> int:
    # f32 -> 8, bf16 -> 16, int8/fp8 -> 32 (sub-32-bit dtypes pack along sublanes).
    return max(8, 32 // itemsize)


# --------------------------- kernels ---------------------------------------

def _gap_sum_kernel(x_ref, o_ref, *, inv_k):
    # x_ref: (tm, K) block, K on the lane axis. Upcast fuses into the reduce.
    s = jnp.sum(x_ref[...], axis=1, dtype=jnp.float32, keepdims=True)   # (tm, 1)
    o_ref[...] = (s * inv_k).astype(o_ref.dtype)


def _gap_group_kernel(x_ref, o_ref, *, g, k, inv_k):
    # x_ref: (tm, G*K) block — G spatial maps packed per row for wide DMA
    # segments / full lanes. Segmented sum over each K-chunk via an MXU matmul
    # with a block-diagonal 0/1 matrix (MXU is idle here; avoids a
    # lane-splitting reshape/relayout).
    x = x_ref[...]
    gk = g * k
    row = lax.broadcasted_iota(jnp.int32, (gk, g), 0)
    col = lax.broadcasted_iota(jnp.int32, (gk, g), 1)
    sel = (row // k == col).astype(x.dtype)                     # (G*K, G)
    s = jnp.dot(x, sel, preferred_element_type=jnp.float32)     # (tm, G)
    o_ref[...] = (s * inv_k).astype(o_ref.dtype)


def _gap_ktiled_kernel(x_ref, o_ref, acc_ref, *, k_total, tk, inv_k, need_mask):
    # Very large H*W: K tiled along a second ("arbitrary") grid axis with an
    # f32 accumulator scratch; init at k==0, finalize at k==last.
    kidx = pl.program_id(1)

    @pl.when(kidx == 0)
    def _():
        acc_ref[...] = jnp.zeros_like(acc_ref)

    x = x_ref[...]
    if need_mask:
        lane = lax.broadcasted_iota(jnp.int32, x.shape, 1) + kidx * tk
        x = jnp.where(lane < k_total, x, jnp.zeros_like(x))
    acc_ref[...] += jnp.sum(x, axis=1, dtype=jnp.float32, keepdims=True)

    @pl.when(kidx == pl.num_programs(1) - 1)
    def _():
        o_ref[...] = (acc_ref[...] * inv_k).astype(o_ref.dtype)


# --------------------------- wrapper ----------------------------------------

def global_average_pooling(x, *, max_block_rows=16384,
                           vmem_per_buffer_bytes=12 * 1024 * 1024):
    """Equivalent of torch.mean(x, (2, 3)) for an NCHW tensor -> (N, C)."""
    N, C, H, W = x.shape
    K = H * W
    M = N * C
    dtype = x.dtype
    itemsize = jnp.dtype(dtype).itemsize
    sub = _sublane_multiple(itemsize)
    inv_k = 1.0 / float(K)

    # v7x has only 64 MiB VMEM/TC: keep each (double-buffered) input buffer
    # <= ~20 MiB regardless of what the caller asks for.
    per_buf = int(min(max(vmem_per_buffer_bytes, 64 * 1024), 20 * 1024 * 1024))
    limit_floor = 32 * 1024 * 1024       # above v5e's 16 MiB default scoped limit
    limit_cap = 48 * 1024 * 1024         # safe within v7x's 64 MiB physical VMEM

    # Small-K packing: G spatial maps per kernel row (G must divide M exactly).
    g = 1
    if K * itemsize < 512:
        for cand in range(min(16, M), 1, -1):
            if M % cand == 0 and cand * K <= 2048:
                g = cand
                break

    width = g * K
    width_pad_bytes = _round_up(width, 128) * itemsize   # lane-padded footprint
    m_rows = M // g
    rows_min = min(sub, m_rows)

    if rows_min * width_pad_bytes <= per_buf:
        # -------- single-pass, full-K (possibly grouped) path ----------------
        x2 = x.reshape(m_rows, width)          # row-major contiguous: free view

        rows_fit = per_buf // width_pad_bytes
        tm = min(max_block_rows, rows_fit)
        tm = max(sub, (tm // sub) * sub)
        if pl.cdiv(m_rows, tm) <= 1:
            if m_rows > sub:
                # >= 2 grid steps so both v7x TensorCores get work.
                tm = _round_up(pl.cdiv(m_rows, 2), sub)
            else:
                tm = m_rows                    # single exact block
        grid = (pl.cdiv(m_rows, tm),)          # ragged last block, no padding

        if g == 1:
            kernel = functools.partial(_gap_sum_kernel, inv_k=inv_k)
        else:
            kernel = functools.partial(_gap_group_kernel, g=g, k=K, inv_k=inv_k)

        tile_bytes = tm * _round_up(width, 128) * itemsize
        vmem_limit = int(min(limit_cap,
                             max(limit_floor, 2 * tile_bytes + 4 * 1024 * 1024)))

        out = pl.pallas_call(
            kernel,
            out_shape=jax.ShapeDtypeStruct((m_rows, g), dtype),
            grid_spec=pltpu.PrefetchScalarGridSpec(
                num_scalar_prefetch=0,
                grid=grid,
                in_specs=[pl.BlockSpec((tm, width), lambda i: (i, 0))],
                out_specs=pl.BlockSpec((tm, g), lambda i: (i, 0)),
            ),
            compiler_params=pltpu.CompilerParams(
                dimension_semantics=("parallel",),
                vmem_limit_bytes=vmem_limit,
            ),
        )(x2)
        return out.reshape(N, C)

    # -------- K-tiled path (very large H*W) ----------------------------------
    x2 = x.reshape(M, K)
    tm = M if M < sub else sub
    tk = max(128, (per_buf // max(1, tm * itemsize)) // 128 * 128)
    tk = min(tk, _round_up(K, 128))
    grid = (pl.cdiv(M, tm), pl.cdiv(K, tk))
    need_mask = (K % tk) != 0
    kernel = functools.partial(_gap_ktiled_kernel, k_total=K, tk=tk,
                               inv_k=inv_k, need_mask=need_mask)

    tile_bytes = tm * tk * itemsize
    vmem_limit = int(min(limit_cap,
                         max(limit_floor, 2 * tile_bytes + 4 * 1024 * 1024)))

    out = pl.pallas_call(
        kernel,
        out_shape=jax.ShapeDtypeStruct((M, 1), dtype),
        grid_spec=pltpu.PrefetchScalarGridSpec(
            num_scalar_prefetch=0,
            grid=grid,
            in_specs=[pl.BlockSpec((tm, tk), lambda i, kk: (i, kk))],
            out_specs=pl.BlockSpec((tm, 1), lambda i, kk: (i, 0)),
            scratch_shapes=[pltpu.VMEM((tm, 1), jnp.float32)],
        ),
        compiler_params=pltpu.CompilerParams(
            dimension_semantics=("parallel", "arbitrary"),
            vmem_limit_bytes=vmem_limit,
        ),
    )(x2)
    return out.reshape(N, C)


# --------------------------- self-test ---------------------------------------

if __name__ == "__main__":
    key = jax.random.PRNGKey(0)

    def _check(x, atol=1e-5, rtol=1e-5, **kw):
        y = global_average_pooling(x, **kw)
        jax.block_until_ready(y)
        ref = jnp.mean(x.astype(jnp.float32), axis=(2, 3)).astype(x.dtype)
        assert y.shape == ref.shape, (y.shape, ref.shape)
        assert bool(jnp.allclose(y.astype(jnp.float32), ref.astype(jnp.float32),
                                 atol=atol, rtol=rtol)), "mismatch vs reference"
        return y

    # 1) Primary case (matches the module's NCHW usage), G=1 single-pass path.
    k1, k2, k3, k4 = jax.random.split(key, 4)
    x1 = jax.random.normal(k1, (2, 4, 16, 16), dtype=jnp.float32)
    _check(x1)

    # 2) Small spatial (7x7): exercises the grouped (packed-K) path.
    x2 = jax.random.normal(k2, (2, 8, 7, 7), dtype=jnp.float32)
    _check(x2)

    # 3) Ragged row grid + >=2-step split (M=15 not a multiple of the block).
    x3 = jax.random.normal(k3, (3, 5, 16, 16), dtype=jnp.float32)
    _check(x3)

    # 4) K-tiled path (forced via a tiny per-buffer budget; ragged last K block).
    x4 = jax.random.normal(k4, (2, 4, 8, 24), dtype=jnp.float32)
    _check(x4, vmem_per_buffer_bytes=4096)

    print("KERNEL_OK")
</pallas_src>

<mosaic_0001>
module attributes {stable_mosaic.version = 11 : i64} {
  func.func @_gap_sum_kernel(%arg0: i32, %arg1: memref<8x256xf32, #tpu.memory_space<vmem>>, %arg2: memref<8x1xf32, #tpu.memory_space<vmem>>) attributes {dimension_semantics = [#tpu.dimension_semantics<parallel>], iteration_bounds = array<i64: 1>, scalar_prefetch = 0 : i64, scratch_operands = 0 : i64, tpu.core_type = #tpu.core_type<tc>, window_params = [{transform_indices = @transform_0, window_bounds = array<i64: 8, 256>}, {transform_indices = @transform_1, window_bounds = array<i64: 8, 1>}]} {
    %c0 = arith.constant 0 : index
    %c0_0 = arith.constant 0 : index
    %0 = vector.load %arg1[%c0, %c0_0] : memref<8x256xf32, #tpu.memory_space<vmem>>, vector<8x256xf32>
    %cst = arith.constant dense<0.000000e+00> : vector<8xf32>
    %1 = vector.multi_reduction <add>, %0, %cst [1] : vector<8x256xf32> to vector<8xf32>
    %2 = vector.shape_cast %1 : vector<8xf32> to vector<8x1xf32>
    %cst_1 = arith.constant 3.906250e-03 : f32
    %3 = vector.broadcast %cst_1 : f32 to vector<8x1xf32>
    %4 = arith.mulf %2, %3 : vector<8x1xf32>
    %c0_2 = arith.constant 0 : index
    %c0_3 = arith.constant 0 : index
    %5 = vector.load %arg2[%c0_2, %c0_3] : memref<8x1xf32, #tpu.memory_space<vmem>>, vector<8x1xf32>
    tpu.vector_store %arg2[%c0_2, %c0_3], %4 {strides = array<i32>} : memref<8x1xf32, #tpu.memory_space<vmem>>, vector<8x1xf32>,
    return
  }
  func.func @transform_0(%arg0: i32) -> (i32, i32) {
    %c0_i32 = arith.constant 0 : i32
    %c0_i32_0 = arith.constant 0 : i32
    return %arg0, %c0_i32 : i32, i32
  }
  func.func @transform_1(%arg0: i32) -> (i32, i32) {
    %c0_i32 = arith.constant 0 : i32
    %c0_i32_0 = arith.constant 0 : i32
    return %arg0, %c0_i32 : i32, i32
  }
}

</mosaic_0001>

<bundles_post_ra>
// kernel: tpu_custom_call.1
= control target key start
LH: loop header
LB: loop body
LE: loop exit
PB: predicated region body
PF: predicated region fallthrough
CT: control target
= control target key end

     0   :  { %6 = vsyncpa [#allocation3], 0  ;;  %s58_s6 = smov [#allocation2]   ;;  %s84_s0 = inlined_call_operand.hbm [shape: f32[8,256], index: 0, kind: input, shape index: {}]   ;;  %s85_s1 = inlined_call_operand.vmem [shape: f32[8,1], index: 1, kind: output, shape index: {}]  }
   0x1   :  { %s13_s7 = sshll.u32 %s58_s6, 4  ;;  %s34_s10 = scalar_lea.hbm %s84_s0, 256  ;;  %s14_s7 = int_to_ptr.vmem [resolvable:$true] %s13_s7 }
   0x2   :  { %p35_p0 = scmp.ne.s32.totalorder %s84_s0, %s34_s10  ;;  %p38_p1 = scmp.lt.u32.totalorder %s34_s10, %s84_s0 }
   0x4   :  { %p40_p2 = pnand %p38_p1, %p35_p0 }
   0x6   :  { %43 = shalt.err (!%p40_p2)
}
   0x7   :  { %s44_s15 = scalar_lea.vmem %s14_s7, 256  ;;  %p49_p4 = scmp.lt.s32.totalorder %s14_s7, %s14_s7 }
   0x8   :  { %p45_p3 = scmp.ne.s32.totalorder %s14_s7, %s44_s15  ;;  %p50_p5 = scmp.lt.s32.totalorder %s44_s15, %s44_s15 }
   0xa   :  { %p51_p6 = por %p50_p5, %p49_p4 }
   0xc   :  { %p52_p7 = pnand %p51_p6, %p45_p3 }
   0xe   :  { %55 = shalt.err (!%p52_p7)
}
   0xf   :  { %16 = dma.hbm_to_vmem [thread:$0]  %s84_s0, 256, %s14_s7, [#allocation3]  }
  0x10   :  { %56 = dma.done.wait [#allocation3], 256  }
  0x11   :  { %57 = vsyncadd [#allocation3], 4294967040  ;;  %v20_v0 = vld [vmem:[#allocation2] sm:$0xff]  ;;  %v21_v1 = vld [vmem:[#allocation2 + $0x8] sm:$0xff]  ;;  %vm26_vm0 = vcmask 7168  }
  0x12   :  { %v22_v2 = vadd.f32 %v21_v1, %v20_v0 }
  0x14   :  { %23 = vadd.xlane.f32.xlu0 %v22_v2 }
  0xa1   :  { %v24_v3 = vpop.xlane.xlu0 %23 }
  0xa2   :  { %v25_v4 = vmul.f32 0.00390625, %v24_v3 }
  0xa4   :  { %27 = vst.msk [vmem:[%s85_s1] sm:$0xff] %vm26_vm0, %v25_v4 }
  0xa5   :  { %32 = vsyncpa [#allocation3], 1 }

</bundles_post_ra>
